<compile_context>
chip_gen: v7x
topology: tpu7x:2x2x1
jax: 0.10.0
libtpu: 0.0.40
codegen_flags: <defaults>
</compile_context>

<pallas_src>
import math
import functools

import jax
import jax.numpy as jnp
from jax.experimental import pallas as pl
from jax.experimental.pallas import tpu as pltpu


_INV_SQRT2 = 1.0 / math.sqrt(2.0)

# Working-set budget / scoped-VMEM cap chosen to be safe on v7x (64 MiB
# physical per TensorCore); v5e/v6e (128 MiB) are automatically fine.
_VMEM_BUDGET = 48 * 1024 * 1024
_VMEM_LIMIT_CAP = 56 * 1024 * 1024


def _round_up(x: int, m: int) -> int:
    return ((x + m - 1) // m) * m


def _erf_gelu_f32(x):
    # x * 0.5 * (1 + erf(x / sqrt(2)))  -- exact PyTorch `gelu`, constants
    # folded into multiplies (no divide).
    return x * (0.5 + 0.5 * jax.lax.erf(x * _INV_SQRT2))


def _gelu_dense_kernel(x_ref, w_ref, b_ref, o_ref):
    # x_ref: (tm, K), w_ref: (K, tn), b_ref: (1, tn), o_ref: (tm, tn)
    acc = jnp.dot(x_ref[...], w_ref[...], preferred_element_type=jnp.float32)
    acc = acc + b_ref[...].astype(jnp.float32)
    o_ref[...] = _erf_gelu_f32(acc).astype(o_ref.dtype)


def _gelu_dense_ksplit_kernel(x_ref, w_ref, b_ref, o_ref, acc_ref):
    # Same as above but with a K reduction axis (innermost grid dim) and an
    # f32 accumulator that lives across the K sweep.
    k = pl.program_id(2)

    @pl.when(k == 0)
    def _():
        acc_ref[...] = jnp.zeros_like(acc_ref)

    acc_ref[...] += jnp.dot(x_ref[...], w_ref[...],
                            preferred_element_type=jnp.float32)

    @pl.when(k == pl.num_programs(2) - 1)
    def _():
        acc = acc_ref[...] + b_ref[...].astype(jnp.float32)
        o_ref[...] = _erf_gelu_f32(acc).astype(o_ref.dtype)


def _choose_tiles(M, K, N, in_bytes, w_bytes, out_bytes, tile_m, tile_n):
    """Pick (tm, tn, tk, vmem_bytes) respecting the cross-generation budget."""
    # Natural sublane tiling: 8 for 4-byte, 16 for 2-byte, 32 for 1-byte.
    sub = {1: 32, 2: 16, 4: 8}.get(in_bytes, 8)
    tile_m = max(_round_up(tile_m, sub), sub)
    tm = M if M <= tile_m else tile_m          # full-M block is always legal

    grid_n = pl.cdiv(N, tile_n)
    # Single block -> use full N (legal for any N, no padding).  Otherwise a
    # multiple of 128 that evenly covers N with minimal overshoot (BERT-base
    # N=3072 -> tn=1536, zero padding).
    tn = N if grid_n == 1 else _round_up(pl.cdiv(N, grid_n), 128)

    def need(tm_, tn_, tk_, split):
        b = (2 * tm_ * tk_ * in_bytes          # x blocks (double-buffered)
             + 2 * tk_ * tn_ * w_bytes         # weight blocks
             + 2 * 8 * tn_ * w_bytes           # bias blocks (sublane-padded)
             + 2 * tm_ * tn_ * out_bytes)      # output blocks
        if split:
            b += tm_ * tn_ * 4                 # f32 accumulator scratch
        return b

    tk = K
    if need(tm, tn, tk, split=False) > _VMEM_BUDGET and K % 128 == 0 and K > 512:
        # Split K: largest divisor of K that is a multiple of 128 and fits.
        for cand in range(K // 128, 0, -1):
            tk_c = cand * 128
            if K % tk_c == 0 and need(tm, tn, tk_c, split=True) <= _VMEM_BUDGET:
                tk = tk_c
                break
        else:
            tk = 128

    # Last resort: shrink tm until the working set fits.
    while need(tm, tn, tk, split=(tk != K)) > _VMEM_BUDGET and tm > 2 * sub:
        tm = _round_up(max(tm // 2, sub), sub)

    return tm, tn, tk, need(tm, tn, tk, split=(tk != K))


@functools.partial(jax.jit, static_argnames=("tile_m", "tile_n"))
def bert_intermediate(hidden_states, weight, bias, *, tile_m=512, tile_n=2048):
    """gelu(hidden_states @ weight + bias)  (exact erf-GELU).

    hidden_states: [B, S, K]; weight: [K, N]; bias: [N] -> [B, S, N].
    Output dtype follows hidden_states.dtype; matmul accumulates in f32.
    Feed bf16 activations/weights for MXU peak (esp. v5e); epilogue stays f32.
    """
    B, S, K = hidden_states.shape
    Kw, N = weight.shape
    assert K == Kw, "weight shape mismatch"
    M = B * S

    x2d = hidden_states.reshape(M, K)
    b2d = bias.reshape(1, N)
    out_dtype = hidden_states.dtype

    tm, tn, tk, vmem_bytes = _choose_tiles(
        M, K, N,
        hidden_states.dtype.itemsize, weight.dtype.itemsize,
        jnp.dtype(out_dtype).itemsize, tile_m, tile_n)

    grid_m = pl.cdiv(M, tm)
    grid_n = pl.cdiv(N, tn)
    grid_k = pl.cdiv(K, tk)

    # Weight/bias blocks only depend on the outer N axis; with a single N
    # block they are constant for the whole grid -> single-buffer to halve
    # resident weight VMEM.  Otherwise keep default double-buffering.
    wb_mode = pl.Buffered(1) if grid_n == 1 else None

    vmem_limit = int(min(max(vmem_bytes * 5 // 4 + (2 << 20), 32 << 20),
                         _VMEM_LIMIT_CAP))

    if grid_k == 1:
        out2d = pl.pallas_call(
            _gelu_dense_kernel,
            out_shape=jax.ShapeDtypeStruct((M, N), out_dtype),
            grid_spec=pltpu.PrefetchScalarGridSpec(
                num_scalar_prefetch=0,
                # N outer, M inner: each weight column block is streamed from
                # HBM once and reused across every M tile.
                grid=(grid_n, grid_m),
                in_specs=[
                    pl.BlockSpec((tm, K), lambda j, i: (i, 0)),
                    pl.BlockSpec((K, tn), lambda j, i: (0, j),
                                 pipeline_mode=wb_mode),
                    pl.BlockSpec((1, tn), lambda j, i: (0, j),
                                 pipeline_mode=wb_mode),
                ],
                out_specs=pl.BlockSpec((tm, tn), lambda j, i: (i, j)),
            ),
            compiler_params=pltpu.CompilerParams(
                dimension_semantics=("parallel", "parallel"),
                vmem_limit_bytes=vmem_limit,
            ),
        )(x2d, weight, b2d)
    else:
        out2d = pl.pallas_call(
            _gelu_dense_ksplit_kernel,
            out_shape=jax.ShapeDtypeStruct((M, N), out_dtype),
            grid_spec=pltpu.PrefetchScalarGridSpec(
                num_scalar_prefetch=0,
                grid=(grid_n, grid_m, grid_k),   # K innermost (reduction)
                in_specs=[
                    pl.BlockSpec((tm, tk), lambda j, i, k: (i, k)),
                    pl.BlockSpec((tk, tn), lambda j, i, k: (k, j)),
                    pl.BlockSpec((1, tn), lambda j, i, k: (0, j)),
                ],
                out_specs=pl.BlockSpec((tm, tn), lambda j, i, k: (i, j)),
                scratch_shapes=[pltpu.VMEM((tm, tn), jnp.float32)],
            ),
            compiler_params=pltpu.CompilerParams(
                dimension_semantics=("parallel", "parallel", "arbitrary"),
                vmem_limit_bytes=vmem_limit,
            ),
        )(x2d, weight, b2d)

    return out2d.reshape(B, S, N)


def _ref_gelu_dense(x, w, b):
    y = jnp.matmul(x, w, precision=jax.lax.Precision.HIGHEST) + b
    return y * 0.5 * (1.0 + jax.lax.erf(y / math.sqrt(2.0)))


if __name__ == "__main__":
    key = jax.random.PRNGKey(0)
    k_x, k_w, k_b, k_x2, k_w2, k_b2 = jax.random.split(key, 6)

    # --- small shapes consistent with BertIntermediate.forward -------------
    batch, seq, hidden_in, intermediate_size = 2, 8, 32, 64
    hidden_states = jax.random.normal(k_x, (batch, seq, hidden_in), jnp.float32)
    weight = jax.random.normal(k_w, (hidden_in, intermediate_size), jnp.float32) * 0.02
    bias = jax.random.normal(k_b, (intermediate_size,), jnp.float32) * 0.02

    out = bert_intermediate(hidden_states, weight, bias)
    out = jax.block_until_ready(out)
    ref = _ref_gelu_dense(hidden_states, weight, bias)
    assert out.shape == (batch, seq, intermediate_size)
    assert jnp.allclose(out, ref, atol=1e-5, rtol=1e-5)

    # --- second check: exercises grid_n > 1 and a ragged (masked) M block --
    b2_, s2_, k2_, n2_ = 2, 300, 128, 2304     # M=600 (ragged vs tm=512)
    hs2 = jax.random.normal(k_x2, (b2_, s2_, k2_), jnp.float32)
    w2 = jax.random.normal(k_w2, (k2_, n2_), jnp.float32) * 0.02
    bb2 = jax.random.normal(k_b2, (n2_,), jnp.float32) * 0.02
    out2 = jax.block_until_ready(bert_intermediate(hs2, w2, bb2))
    ref2 = _ref_gelu_dense(hs2, w2, bb2)
    assert out2.shape == (b2_, s2_, n2_)
    assert jnp.allclose(out2, ref2, atol=1e-3, rtol=1e-3)

    print("KERNEL_OK")
</pallas_src>

<mosaic_0001>
module attributes {stable_mosaic.version = 11 : i64} {
  func.func @_gelu_dense_kernel(%arg0: i32, %arg1: i32, %arg2: memref<16x32xf32, #tpu.memory_space<vmem>>, %arg3: memref<32x64xf32, #tpu.memory_space<vmem>>, %arg4: memref<1x64xf32, #tpu.memory_space<vmem>>, %arg5: memref<16x64xf32, #tpu.memory_space<vmem>>) attributes {dimension_semantics = [#tpu.dimension_semantics<parallel>, #tpu.dimension_semantics<parallel>], iteration_bounds = array<i64: 1, 1>, scalar_prefetch = 0 : i64, scratch_operands = 0 : i64, tpu.core_type = #tpu.core_type<tc>, window_params = [{transform_indices = @transform_0, window_bounds = array<i64: 16, 32>}, {pipeline_mode = #tpu.pipeline_mode<synchronous>, transform_indices = @transform_1, window_bounds = array<i64: 32, 64>}, {pipeline_mode = #tpu.pipeline_mode<synchronous>, transform_indices = @transform_2, window_bounds = array<i64: 1, 64>}, {transform_indices = @transform_3, window_bounds = array<i64: 16, 64>}]} {
    %c0 = arith.constant 0 : index
    %c0_0 = arith.constant 0 : index
    %0 = vector.load %arg2[%c0, %c0_0] : memref<16x32xf32, #tpu.memory_space<vmem>>, vector<16x32xf32>
    %c0_1 = arith.constant 0 : index
    %c0_2 = arith.constant 0 : index
    %1 = vector.load %arg3[%c0_1, %c0_2] : memref<32x64xf32, #tpu.memory_space<vmem>>, vector<32x64xf32>
    %cst = arith.constant dense<0.000000e+00> : vector<16x64xf32>
    %2 = tpu.matmul %0, %1, %cst {dimension_numbers = #tpu.dot_dimension_numbers<[1], [0], [0], [1], [0, 0, 1, 1], [], []>} : vector<16x32xf32>, vector<32x64xf32>, vector<16x64xf32> -> vector<16x64xf32>
    %c0_3 = arith.constant 0 : index
    %c0_4 = arith.constant 0 : index
    %3 = vector.load %arg4[%c0_3, %c0_4] : memref<1x64xf32, #tpu.memory_space<vmem>>, vector<1x64xf32>
    %4 = vector.broadcast %3 : vector<1x64xf32> to vector<16x64xf32>
    %5 = arith.addf %2, %4 : vector<16x64xf32>
    %cst_5 = arith.constant 0.707106769 : f32
    %6 = vector.broadcast %cst_5 : f32 to vector<16x64xf32>
    %7 = arith.mulf %5, %6 : vector<16x64xf32>
    %8 = math.erf %7 : vector<16x64xf32>
    %cst_6 = arith.constant 5.000000e-01 : f32
    %9 = vector.broadcast %cst_6 : f32 to vector<16x64xf32>
    %10 = arith.mulf %9, %8 : vector<16x64xf32>
    %cst_7 = arith.constant 5.000000e-01 : f32
    %11 = vector.broadcast %cst_7 : f32 to vector<16x64xf32>
    %12 = arith.addf %11, %10 : vector<16x64xf32>
    %13 = arith.mulf %5, %12 : vector<16x64xf32>
    %c0_8 = arith.constant 0 : index
    %c0_9 = arith.constant 0 : index
    %14 = vector.load %arg5[%c0_8, %c0_9] : memref<16x64xf32, #tpu.memory_space<vmem>>, vector<16x64xf32>
    tpu.vector_store %arg5[%c0_8, %c0_9], %13 {strides = array<i32>} : memref<16x64xf32, #tpu.memory_space<vmem>>, vector<16x64xf32>,
    return
  }
  func.func @transform_0(%arg0: i32, %arg1: i32) -> (i32, i32) {
    %c0_i32 = arith.constant 0 : i32
    %c0_i32_0 = arith.constant 0 : i32
    return %arg1, %c0_i32 : i32, i32
  }
  func.func @transform_1(%arg0: i32, %arg1: i32) -> (i32, i32) {
    %c0_i32 = arith.constant 0 : i32
    %c0_i32_0 = arith.constant 0 : i32
    return %c0_i32, %arg0 : i32, i32
  }
  func.func @transform_2(%arg0: i32, %arg1: i32) -> (i32, i32) {
    %c0_i32 = arith.constant 0 : i32
    %c0_i32_0 = arith.constant 0 : i32
    return %c0_i32, %arg0 : i32, i32
  }
  func.func @transform_3(%arg0: i32, %arg1: i32) -> (i32, i32) {
    %c0_i32 = arith.constant 0 : i32
    return %arg1, %arg0 : i32, i32
  }
}

</mosaic_0001>

<bundles_post_ra>
// kernel: bert_intermediate.1
= control target key start
LH: loop header
LB: loop body
LE: loop exit
PB: predicated region body
PF: predicated region fallthrough
CT: control target
= control target key end

     0   :  { %8 = vsyncpa [#allocation3], 0  ;;  %s351_s0 = inlined_call_operand.hbm [shape: f32[16,32], index: 0, kind: input, shape index: {}]   ;;  %s352_s1 = inlined_call_operand.hbm [shape: f32[32,64], index: 1, kind: input, shape index: {}]   ;;  %s353_s2 = inlined_call_operand.vmem [shape: f32[1,64], index: 2, kind: input, shape index: {}]   ;;  %s354_s3 = inlined_call_operand.hbm [shape: f32[16,64], index: 3, kind: output, shape index: {}]  }
   0x1   :  { %9 = vsyncpa [#allocation6], 0 }
   0x2   :  { %10 = vsyncpa [#allocation4], 0  ;;  %s278_s12 = smov [#allocation2]   ;;  %s206_s16 = scalar_lea.hbm %s351_s0, 256 }
   0x3   :  { %s16_s13 = sshll.u32 %s278_s12, 4  ;;  %p207_p0 = scmp.ne.s32.totalorder %s351_s0, %s206_s16  ;;  %s17_s13 = int_to_ptr.vmem [resolvable:$true] %s16_s13 }
   0x4   :  { %p210_p1 = scmp.lt.u32.totalorder %s206_s16, %s351_s0 }
   0x6   :  { %p212_p2 = pnand %p210_p1, %p207_p0 }
   0x8   :  { %215 = shalt.err (!%p212_p2)
}
   0x9   :  { %s216_s21 = scalar_lea.vmem %s17_s13, 256  ;;  %p221_p4 = scmp.lt.s32.totalorder %s17_s13, %s17_s13 }
   0xa   :  { %p217_p3 = scmp.ne.s32.totalorder %s17_s13, %s216_s21  ;;  %p222_p5 = scmp.lt.s32.totalorder %s216_s21, %s216_s21 }
   0xc   :  { %p223_p6 = por %p222_p5, %p221_p4 }
   0xe   :  { %p224_p7 = pnand %p223_p6, %p217_p3 }
  0x10   :  { %227 = shalt.err (!%p224_p7)
}
  0x11   :  { %s279_s22 = smov 128   ;;  %s280_s23 = smov 8  }
  0x12   :  { %22 = dma.hbm_to_vmem [thread:$0]  %s351_s0, 256, %s17_s13, [#allocation3], %s279_s22, %s279_s22, %s280_s23  }
  0x13   :  { %s281_s26 = smov [#allocation5]   ;;  %s228_s30 = scalar_lea.hbm %s352_s1, 512 }
  0x14   :  { %s28_s27 = sshll.u32 %s281_s26, 4  ;;  %p229_p8 = scmp.ne.s32.totalorder %s352_s1, %s228_s30  ;;  %s29_s27 = int_to_ptr.vmem [resolvable:$true] %s28_s27 }
  0x15   :  { %p232_p9 = scmp.lt.u32.totalorder %s228_s30, %s352_s1 }
  0x17   :  { %p234_p10 = pnand %p232_p9, %p229_p8 }
  0x19   :  { %237 = shalt.err (!%p234_p10)
}
  0x1a   :  { %s238_s8 = scalar_lea.vmem %s29_s27, 512  ;;  %p243_p12 = scmp.lt.s32.totalorder %s29_s27, %s29_s27 }
  0x1b   :  { %p239_p11 = scmp.ne.s32.totalorder %s29_s27, %s238_s8  ;;  %p244_p13 = scmp.lt.s32.totalorder %s238_s8, %s238_s8 }
  0x1d   :  { %p245_p0 = por %p244_p13, %p243_p12 }
  0x1f   :  { %p246_p1 = pnand %p245_p0, %p239_p11 }
  0x21   :  { %249 = shalt.err (!%p246_p1)
}
  0x22   :  { %34 = dma.hbm_to_vmem [thread:$0]  %s352_s1, 512, %s29_s27, [#allocation6], %s279_s22, %s279_s22, %s280_s23  }
  0x23   :  { %272 = dma.done.wait [#allocation3], 256  }
  0x24   :  { %273 = vsyncadd [#allocation3], 4294967040 }
  0x25   :  { %274 = dma.done.wait [#allocation6], 512  }
  0x26   :  { %275 = vsyncadd [#allocation6], 4294966784  ;;  %vm56_vm0 = vcmask 261120   ;;  %v45_v0 = vld [vmem:[#allocation5] sm:$0xff]  ;;  %v46_v1 = vld [vmem:[#allocation5 + $0x8] sm:$0xff]  ;;  %s282_s11 = smov [#allocation7]  }
  0x27   :  { %v47_v2 = vld [vmem:[#allocation5 + $0x10] sm:$0xff]  ;;  %v189_v3 = vpack.c.bf16 %v46_v1, %v45_v0  ;;  %v48_v4 = vld [vmem:[#allocation5 + $0x18] sm:$0xff]  ;;  %s156_s12 = sshll.u32 %s282_s11, 4  ;;  %vm148_vm1 = vcmask 523264   ;;  %s157_s12 = int_to_ptr.vmem [resolvable:$true] %s156_s12 }
  0x28   :  { %v43_v5 = vld [vmem:[#allocation2] sm:$0xff]  ;;  %v193_v6 = vpack.c.bf16 %v48_v4, %v47_v2  ;;  %v44_v7 = vld [vmem:[#allocation2 + $0x8] sm:$0xff]  ;;  %p255_p3 = scmp.lt.s32.totalorder %s157_s12, %s157_s12 }
  0x29   :  { %186 = vmatprep.mubr.msk.f32.mxu0 %vm56_vm0, %v43_v5  ;;  %190 = vmatprep.subr.bf16.mxu0 %v189_v3  ;;  %v169_v8 = vld [vmem:[%s353_s2] ss:$0 sm:$0xff]  ;;  %s250_s2 = scalar_lea.vmem %s157_s12, 256 }
  0x2a   :  { %192 = vmatpush3.bf16.msra.mxu0 %v189_v3  ;;  %p251_p2 = scmp.ne.s32.totalorder %s157_s12, %s250_s2  ;;  %p256_p4 = scmp.lt.s32.totalorder %s250_s2, %s250_s2 }
  0x2b   :  { %194 = vmatprep.subr.bf16.mxu0 %v193_v6 }
  0x2c   :  { %p257_p5 = por %p256_p4, %p255_p3 }
  0x2e   :  { %196 = vmatpush3.bf16.msra.mxu0 %v193_v6  ;;  %p258_p6 = pnand %p257_p5, %p251_p2 }
  0x31   :  { %187 = vmatmul.mubr.msk.f32.vlgmr.msra.gmra.mrb[0].mxu0 %vm56_vm0, %v44_v7 }
 0x104   :  { %v188_v9 = vpop.f32.mrb[0].mxu0 }
 0x105   :  { %v135_v10 = vadd.f32 %v188_v9, %v169_v8  ;;  %v129_v11 = vpop.f32.mrb[1].mxu0 }
 0x106   :  { %v130_v12 = vadd.f32 %v169_v8, %v129_v11 }
 0x107   :  { %v139_v13 = vmul.f32 0.70710677, %v135_v10 }
 0x108   :  { %v138_v14 = vmul.f32 0.70710677, %v130_v12 }
 0x109   :  { %202 = verf.f32 %v139_v13 }
 0x10a   :  { %204 = verf.f32 %v138_v14 }
 0x113   :  { %v203_v15 = vpop.eup %202 }
 0x114   :  { %v205_v16 = vpop.eup %204  ;;  %v143_v17 = vmul.f32 0.5, %v203_v15 }
 0x115   :  { %v142_v18 = vmul.f32 0.5, %v205_v16 }
 0x116   :  { %v145_v19 = vadd.f32 0.5, %v143_v17 }
 0x117   :  { %v144_v20 = vadd.f32 0.5, %v142_v18 }
 0x118   :  { %v147_v21 = vmul.f32 %v145_v19, %v135_v10 }
 0x119   :  { %v146_v22 = vmul.f32 %v144_v20, %v130_v12 }
 0x11a   :  { %150 = vst.msk [vmem:[#allocation7 + $0x8] sm:$0xff] %vm148_vm1, %v147_v21 }
 0x11b   :  { %149 = vst.msk [vmem:[#allocation7] sm:$0xff] %vm148_vm1, %v146_v22 }
 0x11c   :  { %261 = shalt.err (!%p258_p6)
}
 0x11d   :  { %s262_s15 = scalar_lea.hbm %s354_s3, 256 }
 0x11e   :  { %p263_p7 = scmp.ne.s32.totalorder %s354_s3, %s262_s15  ;;  %p266_p8 = scmp.lt.u32.totalorder %s262_s15, %s354_s3 }
 0x120   :  { %p268_p9 = pnand %p266_p8, %p263_p7 }
 0x122   :  { %271 = shalt.err (!%p268_p9)
}
 0x123   :  { %162 = dma.vmem_to_hbm [thread:$0]  %s157_s12, 256, %s354_s3, [#allocation4], %s279_s22, %s279_s22, %s280_s23  }
 0x124   :  { %276 = dma.done.wait [#allocation4], 256  }
 0x125   :  { %277 = vsyncadd [#allocation4], 4294967040 }
 0x126   :  { %166 = vsyncpa [#allocation3], 1 }
 0x127   :  { %167 = vsyncpa [#allocation6], 1 }
 0x128   :  { %168 = vsyncpa [#allocation4], 1 }

</bundles_post_ra>
